<compile_context>
chip_gen: v6e
topology: v6e:2x2x1
jax: 0.10.0
libtpu: 0.0.40
codegen_flags: <defaults>
</compile_context>

<pallas_src>
from functools import partial

import jax
import jax.numpy as jnp
from jax import lax
from jax.experimental import pallas as pl
from jax.experimental.pallas import tpu as pltpu

STD_NOISE = 0.1
_LANES = 1024          # lane-dense last dim (multiple of 128)
_MAX_BLOCK_ROWS = 256  # 256 x 1024 f32 = 1 MiB per block


def _round_up(a, b):
    return ((a + b - 1) // b) * b


def _uniform01(shape, base_row, lanes, seed_u32):
    """Counter-based U[0,1) noise: splitmix/murmur-style hash of element index."""
    rows = lax.broadcasted_iota(jnp.int32, shape, 0) + base_row
    cols = lax.broadcasted_iota(jnp.int32, shape, 1)
    idx = (rows * lanes + cols).astype(jnp.uint32)
    h = idx * jnp.uint32(0x9E3779B9) + seed_u32
    h = h ^ (h >> jnp.uint32(16))
    h = h * jnp.uint32(0x85EBCA6B)
    h = h ^ (h >> jnp.uint32(13))
    h = h * jnp.uint32(0xC2B2AE35)
    h = h ^ (h >> jnp.uint32(16))
    mant = (h >> jnp.uint32(9)) | jnp.uint32(0x3F800000)   # float in [1, 2)
    return lax.bitcast_convert_type(mant, jnp.float32) - 1.0


def noise_kernel(seed_ref, nl_ref, x_ref, o_ref, *, block_rows, lanes):
    nl = nl_ref[0]                                  # f32 scalar (SMEM)
    seed = seed_ref[0].astype(jnp.uint32)           # int32 seed (SMEM)
    base_row = pl.program_id(0) * block_rows        # distinct stream per tile
    u = _uniform01((block_rows, lanes), base_row, lanes, seed)
    x = x_ref[...].astype(jnp.float32)
    o_ref[...] = (x + u * nl).astype(o_ref.dtype)


def noise_forward(x, y, seed=0, std_noise=STD_NOISE):
    """x: (B, C, L) array, y: passed through unchanged."""
    n = x.size
    # Global unbiased std (matches torch.Tensor.std(), correction=1).
    noise_level = (jnp.std(x.astype(jnp.float32), ddof=1) * std_noise).reshape(1)
    seed_arr = jnp.asarray(seed, dtype=jnp.int32).reshape(1)

    lanes = _LANES
    rows = max(1, -(-n // lanes))
    block_rows = min(_MAX_BLOCK_ROWS, _round_up(rows, 16))
    rows_p = _round_up(rows, block_rows)
    grid = (rows_p // block_rows,)

    # Lane-dense slab, zero-padded to a whole number of blocks.
    x_flat = x.reshape(-1)
    pad = rows_p * lanes - n
    x_slab = jnp.pad(x_flat, (0, pad)).reshape(rows_p, lanes)

    kernel = partial(noise_kernel, block_rows=block_rows, lanes=lanes)
    itemsize = jnp.dtype(x.dtype).itemsize

    out_slab = pl.pallas_call(
        kernel,
        out_shape=jax.ShapeDtypeStruct((rows_p, lanes), x.dtype),
        grid=grid,
        in_specs=[
            pl.BlockSpec(memory_space=pltpu.SMEM),                # seed
            pl.BlockSpec(memory_space=pltpu.SMEM),                # noise_level
            pl.BlockSpec((block_rows, lanes), lambda i: (i, 0)),  # x tile
        ],
        out_specs=pl.BlockSpec((block_rows, lanes), lambda i: (i, 0)),
        compiler_params=pltpu.CompilerParams(
            dimension_semantics=("parallel",)),
        cost_estimate=pl.CostEstimate(
            flops=3 * n, transcendentals=0,
            bytes_accessed=2 * n * itemsize + n * 4),
    )(seed_arr, noise_level, x_slab)

    out = out_slab.reshape(-1)[:n].reshape(x.shape)
    return out, y


if __name__ == "__main__":
    key = jax.random.PRNGKey(0)
    kx, ky = jax.random.split(key)

    # Small shapes consistent with the module: x is (B, C, L) = (2, 4, 16).
    x = jax.random.normal(kx, (2, 4, 16), dtype=jnp.float32)
    y = jax.random.randint(ky, (2, 16), 0, 10, dtype=jnp.int32)  # passthrough

    out_x, out_y = noise_forward(x, y, seed=0)
    jax.block_until_ready(out_x)
    jax.block_until_ready(out_y)

    # Sanity: added noise must lie in [0, noise_level], y must be untouched.
    nl = float(jnp.std(x, ddof=1) * STD_NOISE)
    diff = out_x - x
    assert out_x.shape == x.shape and out_x.dtype == x.dtype
    assert bool(jnp.all(diff >= -1e-6)), "noise below 0"
    assert bool(jnp.all(diff <= nl * (1.0 + 1e-5) + 1e-6)), "noise above level"
    assert bool(jnp.max(diff) > 0.0), "no noise added"
    assert bool(jnp.all(out_y == y)), "y modified"

    print("KERNEL_OK")
</pallas_src>

<mosaic_0001>
module attributes {stable_mosaic.version = 11 : i64} {
  func.func @noise_kernel(%arg0: i32, %arg1: memref<1xi32, #tpu.memory_space<smem>>, %arg2: memref<1xf32, #tpu.memory_space<smem>>, %arg3: memref<16x1024xf32, #tpu.memory_space<vmem>>, %arg4: memref<16x1024xf32, #tpu.memory_space<vmem>>) attributes {dimension_semantics = [#tpu.dimension_semantics<parallel>], iteration_bounds = array<i64: 1>, scalar_prefetch = 0 : i64, scratch_operands = 0 : i64, tpu.core_type = #tpu.core_type<tc>, window_params = [{transform_indices = @transform_0, window_bounds = array<i64: 1>}, {transform_indices = @transform_1, window_bounds = array<i64: 1>}, {transform_indices = @transform_2, window_bounds = array<i64: 16, 1024>}, {transform_indices = @transform_3, window_bounds = array<i64: 16, 1024>}]} {
    %c0 = arith.constant 0 : index
    %0 = memref.load %arg2[%c0] : memref<1xf32, #tpu.memory_space<smem>>
    %c0_0 = arith.constant 0 : index
    %1 = memref.load %arg1[%c0_0] : memref<1xi32, #tpu.memory_space<smem>>
    %c16_i32 = arith.constant 16 : i32
    %2 = arith.muli %arg0, %c16_i32 : i32
    %3 = tpu.iota {dimensions = array<i32: 0>} : vector<16x1024xi32>
    %4 = vector.broadcast %2 : i32 to vector<16x1024xi32>
    %5 = arith.addi %3, %4 : vector<16x1024xi32>
    %6 = tpu.iota {dimensions = array<i32: 1>} : vector<16x1024xi32>
    %c1024_i32 = arith.constant 1024 : i32
    %7 = vector.broadcast %c1024_i32 : i32 to vector<16x1024xi32>
    %8 = arith.muli %5, %7 : vector<16x1024xi32>
    %9 = arith.addi %8, %6 : vector<16x1024xi32>
    %c-1640531527_i32 = arith.constant -1640531527 : i32
    %10 = vector.broadcast %c-1640531527_i32 : i32 to vector<16x1024xi32>
    %11 = arith.muli %9, %10 : vector<16x1024xi32>
    %12 = vector.broadcast %1 : i32 to vector<16x1024xi32>
    %13 = arith.addi %11, %12 : vector<16x1024xi32>
    %c16_i32_1 = arith.constant 16 : i32
    %14 = vector.broadcast %c16_i32_1 : i32 to vector<16x1024xi32>
    %15 = arith.shrui %13, %14 : vector<16x1024xi32>
    %16 = arith.xori %13, %15 : vector<16x1024xi32>
    %c-2048144789_i32 = arith.constant -2048144789 : i32
    %17 = vector.broadcast %c-2048144789_i32 : i32 to vector<16x1024xi32>
    %18 = arith.muli %16, %17 : vector<16x1024xi32>
    %c13_i32 = arith.constant 13 : i32
    %19 = vector.broadcast %c13_i32 : i32 to vector<16x1024xi32>
    %20 = arith.shrui %18, %19 : vector<16x1024xi32>
    %21 = arith.xori %18, %20 : vector<16x1024xi32>
    %c-1028477387_i32 = arith.constant -1028477387 : i32
    %22 = vector.broadcast %c-1028477387_i32 : i32 to vector<16x1024xi32>
    %23 = arith.muli %21, %22 : vector<16x1024xi32>
    %c16_i32_2 = arith.constant 16 : i32
    %24 = vector.broadcast %c16_i32_2 : i32 to vector<16x1024xi32>
    %25 = arith.shrui %23, %24 : vector<16x1024xi32>
    %26 = arith.xori %23, %25 : vector<16x1024xi32>
    %c9_i32 = arith.constant 9 : i32
    %27 = vector.broadcast %c9_i32 : i32 to vector<16x1024xi32>
    %28 = arith.shrui %26, %27 : vector<16x1024xi32>
    %c1065353216_i32 = arith.constant 1065353216 : i32
    %29 = vector.broadcast %c1065353216_i32 : i32 to vector<16x1024xi32>
    %30 = arith.ori %28, %29 : vector<16x1024xi32>
    %31 = tpu.bitcast %30 : vector<16x1024xi32> -> vector<16x1024xf32>
    %cst = arith.constant 1.000000e+00 : f32
    %32 = vector.broadcast %cst : f32 to vector<16x1024xf32>
    %33 = arith.subf %31, %32 : vector<16x1024xf32>
    %c0_3 = arith.constant 0 : index
    %c0_4 = arith.constant 0 : index
    %34 = vector.load %arg3[%c0_3, %c0_4] : memref<16x1024xf32, #tpu.memory_space<vmem>>, vector<16x1024xf32>
    %35 = vector.broadcast %0 : f32 to vector<16x1024xf32>
    %36 = arith.mulf %33, %35 : vector<16x1024xf32>
    %37 = arith.addf %34, %36 : vector<16x1024xf32>
    %c0_5 = arith.constant 0 : index
    %c0_6 = arith.constant 0 : index
    %38 = vector.load %arg4[%c0_5, %c0_6] : memref<16x1024xf32, #tpu.memory_space<vmem>>, vector<16x1024xf32>
    tpu.vector_store %arg4[%c0_5, %c0_6], %37 {strides = array<i32>} : memref<16x1024xf32, #tpu.memory_space<vmem>>, vector<16x1024xf32>,
    return
  }
  func.func @transform_0(%arg0: i32) -> i32 {
    %c0_i32 = arith.constant 0 : i32
    %c0_i32_0 = arith.constant 0 : i32
    return %c0_i32 : i32
  }
  func.func @transform_1(%arg0: i32) -> i32 {
    %c0_i32 = arith.constant 0 : i32
    %c0_i32_0 = arith.constant 0 : i32
    return %c0_i32 : i32
  }
  func.func @transform_2(%arg0: i32) -> (i32, i32) {
    %c0_i32 = arith.constant 0 : i32
    %c0_i32_0 = arith.constant 0 : i32
    return %arg0, %c0_i32 : i32, i32
  }
  func.func @transform_3(%arg0: i32) -> (i32, i32) {
    %c0_i32 = arith.constant 0 : i32
    %c0_i32_0 = arith.constant 0 : i32
    return %arg0, %c0_i32 : i32, i32
  }
}

</mosaic_0001>

<bundles_post_ra>
// kernel: tpu_custom_call.1
= control target key start
LH: loop header
LB: loop body
LE: loop exit
PB: predicated region body
PF: predicated region fallthrough
CT: control target
= control target key end

     0   :  { %10 = vsyncpa [#allocation5], 0  ;;  %s559_s0 = inlined_call_operand.<no memory space> [shape: s32[1], index: 0, kind: input, shape index: {}]   ;;  %s560_s1 = inlined_call_operand.<no memory space> [shape: f32[1], index: 1, kind: input, shape index: {}]   ;;  %s561_s2 = inlined_call_operand.hbm [shape: f32[16,1024], index: 2, kind: input, shape index: {}]   ;;  %s562_s3 = inlined_call_operand.hbm [shape: f32[16,1024], index: 3, kind: output, shape index: {}]  }
   0x1   :  { %11 = vsyncpa [#allocation6], 0  ;;  %s438_s12 = smov [#allocation4]  }
   0x2   :  { %s21_s13 = sshll.u32 %s438_s12, 4  ;;  %s22_s13 = int_to_ptr.vmem [resolvable:$true] %s21_s13 }
   0x3   :  { %s402_s14 = scalar_lea.vmem %s22_s13, 2048  ;;  %p407_p1 = scmp.lt.s32.totalorder %s22_s13, %s22_s13 }
   0x4   :  { %p403_p0 = scmp.ne.s32.totalorder %s22_s13, %s402_s14  ;;  %p408_p2 = scmp.lt.s32.totalorder %s402_s14, %s402_s14 }
   0x6   :  { %p409_p3 = por %p408_p2, %p407_p1 }
   0x8   :  { %p410_p4 = pnand %p409_p3, %p403_p0 }
   0xa   :  { %413 = shalt.err (!%p410_p4)
}
   0xb   :  { %s439_s15 = smov 1024   ;;  %s440_s16 = smov 64  }
   0xc   :  { %27 = dma.hbm_to_vmem [thread:$0]  %s561_s2, 2048, %s22_s13, [#allocation5], %s439_s15, %s439_s15, %s440_s16  }
   0xd   :  { %434 = dma.done.wait [#allocation5], 2048  }
   0xe   :  { %435 = vsyncadd [#allocation5], 4294965248  ;;  %v34_v0 = vlaneseq  ;;  %v475_v3 = vstv %s559_s0  ;;  %v510_v22 = vstv %s560_s1  ;;  %s441_s1 = smov [#allocation7]  }
   0xf   :  { %s362_s21 = sshll.u32 %s441_s1, 4  ;;  %s363_s21 = int_to_ptr.vmem [resolvable:$true] %s362_s21 }
  0x10   :  { %v468_v1 = vshrl.u32 %v34_v0, 7  ;;  %v470_v2 = vand.u32 127, %v34_v0  ;;  %s414_s22 = scalar_lea.vmem %s363_s21, 2048  ;;  %p419_p6 = scmp.lt.s32.totalorder %s363_s21, %s363_s21 }
  0x11   :  { %p415_p5 = scmp.ne.s32.totalorder %s363_s21, %s414_s22  ;;  %p420_p7 = scmp.lt.s32.totalorder %s414_s22, %s414_s22 }
  0x12   :  { %v49_v4 = vmul.u32 1024, %v468_v1  ;;  %v479_v5 = vadd.s32 128, %v470_v2  ;;  %v482_v6 = vadd.s32 256, %v470_v2  ;;  %v485_v7 = vadd.s32 384, %v470_v2 }
  0x13   :  { %v488_v8 = vadd.s32 512, %v470_v2  ;;  %v491_v9 = vadd.s32 640, %v470_v2  ;;  %v494_v10 = vadd.s32 768, %v470_v2  ;;  %v497_v11 = vadd.s32 896, %v470_v2  ;;  %p421_p8 = por %p420_p7, %p419_p6 }
  0x14   :  { %v51_v12 = vadd.s32 %v49_v4, %v470_v2  ;;  %v52_v13 = vadd.s32 %v49_v4, %v479_v5  ;;  %v53_v14 = vadd.s32 %v49_v4, %v482_v6  ;;  %v54_v15 = vadd.s32 %v49_v4, %v485_v7 }
  0x15   :  { %v55_v16 = vadd.s32 %v49_v4, %v488_v8  ;;  %v56_v17 = vadd.s32 %v49_v4, %v491_v9  ;;  %v57_v18 = vadd.s32 %v49_v4, %v494_v10  ;;  %v58_v19 = vadd.s32 %v49_v4, %v497_v11  ;;  %p422_p9 = pnand %p421_p8, %p415_p5 }
  0x16   :  { %v67_v20 = vmul.u32 2654435769, %v51_v12  ;;  %v68_v21 = vmul.u32 2654435769, %v52_v13 }
  0x17   :  { %v69_v23 = vmul.u32 2654435769, %v53_v14  ;;  %v70_v24 = vmul.u32 2654435769, %v54_v15 }
  0x18   :  { %v84_v25 = vadd.s32 %v475_v3, %v67_v20  ;;  %v85_v26 = vadd.s32 %v475_v3, %v68_v21  ;;  %v71_v27 = vmul.u32 2654435769, %v55_v16  ;;  %v72_v28 = vmul.u32 2654435769, %v56_v17 }
  0x19   :  { %v86_v29 = vadd.s32 %v475_v3, %v69_v23  ;;  %v87_v30 = vadd.s32 %v475_v3, %v70_v24  ;;  %v73_v31 = vmul.u32 2654435769, %v57_v18  ;;  %v74_v32 = vmul.u32 2654435769, %v58_v19 }
  0x1a   :  { %v100_v33 = vshrl.u32 %v84_v25, 16  ;;  %v101_v34 = vshrl.u32 %v85_v26, 16  ;;  %v88_v35 = vadd.s32 %v475_v3, %v71_v27  ;;  %v89_v36 = vadd.s32 %v475_v3, %v72_v28 }
  0x1b   :  { %v102_v37 = vshrl.u32 %v86_v29, 16  ;;  %v103_v38 = vshrl.u32 %v87_v30, 16  ;;  %v90_v39 = vadd.s32 %v475_v3, %v73_v31  ;;  %v91_v40 = vadd.s32 %v475_v3, %v74_v32 }
  0x1c   :  { %v116_v41 = vxor.u32 %v100_v33, %v84_v25  ;;  %v117_v42 = vxor.u32 %v101_v34, %v85_v26  ;;  %v104_v43 = vshrl.u32 %v88_v35, 16  ;;  %v105_v44 = vshrl.u32 %v89_v36, 16 }
  0x1d   :  { %v118_v45 = vxor.u32 %v102_v37, %v86_v29  ;;  %v119_v46 = vxor.u32 %v103_v38, %v87_v30  ;;  %v106_v47 = vshrl.u32 %v90_v39, 16  ;;  %v107_v48 = vshrl.u32 %v91_v40, 16 }
  0x1e   :  { %v132_v49 = vmul.u32 2246822507, %v116_v41  ;;  %v133_v50 = vmul.u32 2246822507, %v117_v42  ;;  %v120_v51 = vxor.u32 %v104_v43, %v88_v35  ;;  %v121_v52 = vxor.u32 %v105_v44, %v89_v36 }
  0x1f   :  { %v134_v53 = vmul.u32 2246822507, %v118_v45  ;;  %v135_v54 = vmul.u32 2246822507, %v119_v46  ;;  %v122_v55 = vxor.u32 %v106_v47, %v90_v39  ;;  %v123_v56 = vxor.u32 %v107_v48, %v91_v40 }
  0x20   :  { %v148_v57 = vshrl.u32 %v132_v49, 13  ;;  %v149_v58 = vshrl.u32 %v133_v50, 13  ;;  %v136_v59 = vmul.u32 2246822507, %v120_v51  ;;  %v137_v60 = vmul.u32 2246822507, %v121_v52 }
  0x21   :  { %v150_v61 = vshrl.u32 %v134_v53, 13  ;;  %v151_v62 = vshrl.u32 %v135_v54, 13  ;;  %v138_v63 = vmul.u32 2246822507, %v122_v55  ;;  %v139_v0 = vmul.u32 2246822507, %v123_v56 }
  0x22   :  { %v164_v4 = vxor.u32 %v148_v57, %v132_v49  ;;  %v165_v12 = vxor.u32 %v149_v58, %v133_v50  ;;  %v152_v13 = vshrl.u32 %v136_v59, 13  ;;  %v153_v14 = vshrl.u32 %v137_v60, 13 }
  0x23   :  { %v166_v15 = vxor.u32 %v150_v61, %v134_v53  ;;  %v167_v16 = vxor.u32 %v151_v62, %v135_v54  ;;  %v154_v17 = vshrl.u32 %v138_v63, 13  ;;  %v155_v18 = vshrl.u32 %v139_v0, 13 }
  0x24   :  { %v180_v19 = vmul.u32 3266489909, %v164_v4  ;;  %v181_v20 = vmul.u32 3266489909, %v165_v12  ;;  %v168_v21 = vxor.u32 %v152_v13, %v136_v59  ;;  %v169_v23 = vxor.u32 %v153_v14, %v137_v60  ;;  %v293_v4 = vld [vmem:[#allocation4 + $0x8] sm:$0xff] }
  0x25   :  { %v182_v24 = vmul.u32 3266489909, %v166_v15  ;;  %v183_v25 = vmul.u32 3266489909, %v167_v16  ;;  %v170_v26 = vxor.u32 %v154_v17, %v138_v63  ;;  %v171_v27 = vxor.u32 %v155_v18, %v139_v0  ;;  %v292_v0 = vld [vmem:[#allocation4] sm:$0xff]  ;;  %v294_v18 = vld [vmem:[#allocation4 + $0x10] sm:$0xff] }
  0x26   :  { %v196_v28 = vshrl.u32 %v180_v19, 16  ;;  %v197_v29 = vshrl.u32 %v181_v20, 16  ;;  %v184_v30 = vmul.u32 3266489909, %v168_v21  ;;  %v185_v31 = vmul.u32 3266489909, %v169_v23 }
  0x27   :  { %v198_v32 = vshrl.u32 %v182_v24, 16  ;;  %v199_v33 = vshrl.u32 %v183_v25, 16  ;;  %v186_v34 = vmul.u32 3266489909, %v170_v26  ;;  %v187_v35 = vmul.u32 3266489909, %v171_v27 }
  0x28   :  { %v212_v36 = vxor.u32 %v196_v28, %v180_v19  ;;  %v213_v37 = vxor.u32 %v197_v29, %v181_v20  ;;  %v200_v38 = vshrl.u32 %v184_v30, 16  ;;  %v201_v39 = vshrl.u32 %v185_v31, 16  ;;  %v295_v19 = vld [vmem:[#allocation4 + $0x18] sm:$0xff]  ;;  %v297_v26 = vld [vmem:[#allocation4 + $0x28] sm:$0xff] }
  0x29   :  { %v214_v40 = vxor.u32 %v198_v32, %v182_v24  ;;  %v215_v41 = vxor.u32 %v199_v33, %v183_v25  ;;  %v202_v42 = vshrl.u32 %v186_v34, 16  ;;  %v203_v43 = vshrl.u32 %v187_v35, 16  ;;  %v296_v25 = vld [vmem:[#allocation4 + $0x20] sm:$0xff]  ;;  %v298_v33 = vld [vmem:[#allocation4 + $0x30] sm:$0xff] }
  0x2a   :  { %v228_v44 = vshrl.u32 %v212_v36, 9  ;;  %v229_v45 = vshrl.u32 %v213_v37, 9  ;;  %v216_v46 = vxor.u32 %v200_v38, %v184_v30  ;;  %v217_v47 = vxor.u32 %v201_v39, %v185_v31 }
  0x2b   :  { %v230_v48 = vshrl.u32 %v214_v40, 9  ;;  %v231_v49 = vshrl.u32 %v215_v41, 9  ;;  %v218_v50 = vxor.u32 %v202_v42, %v186_v34  ;;  %v219_v51 = vxor.u32 %v203_v43, %v187_v35  ;;  %v299_v34 = vld [vmem:[#allocation4 + $0x38] sm:$0xff] }
  0x2c   :  { %v244_v52 = vor.u32 1065353216, %v228_v44  ;;  %v245_v53 = vor.u32 1065353216, %v229_v45  ;;  %v232_v54 = vshrl.u32 %v216_v46, 9  ;;  %v233_v55 = vshrl.u32 %v217_v47, 9 }
  0x2d   :  { %v246_v56 = vor.u32 1065353216, %v230_v48  ;;  %v247_v57 = vor.u32 1065353216, %v231_v49  ;;  %v234_v58 = vshrl.u32 %v218_v50, 9  ;;  %v235_v59 = vshrl.u32 %v219_v51, 9 }
  0x2e   :  { %v374_v60 = vadd.f32 -1.0, %v244_v52  ;;  %v375_v61 = vadd.f32 -1.0, %v245_v53  ;;  %v248_v62 = vor.u32 1065353216, %v232_v54  ;;  %v249_v63 = vor.u32 1065353216, %v233_v55 }
  0x2f   :  { %v376_v12 = vadd.f32 -1.0, %v246_v56  ;;  %v377_v13 = vadd.f32 -1.0, %v247_v57  ;;  %v250_v14 = vor.u32 1065353216, %v234_v58  ;;  %v251_v15 = vor.u32 1065353216, %v235_v59 }
  0x30   :  { %v309_v16 = vmul.f32 %v374_v60, %v510_v22  ;;  %v310_v17 = vmul.f32 %v375_v61, %v510_v22  ;;  %v378_v20 = vadd.f32 -1.0, %v248_v62  ;;  %v379_v21 = vadd.f32 -1.0, %v249_v63 }
  0x31   :  { %v311_v23 = vmul.f32 %v376_v12, %v510_v22  ;;  %v312_v24 = vmul.f32 %v377_v13, %v510_v22  ;;  %v380_v27 = vadd.f32 -1.0, %v250_v14  ;;  %v381_v28 = vadd.f32 -1.0, %v251_v15 }
  0x32   :  { %v325_v29 = vadd.f32 %v309_v16, %v292_v0  ;;  %v326_v30 = vadd.f32 %v310_v17, %v293_v4  ;;  %v313_v31 = vmul.f32 %v378_v20, %v510_v22  ;;  %v314_v32 = vmul.f32 %v379_v21, %v510_v22 }
  0x33   :  { %v327_v35 = vadd.f32 %v311_v23, %v294_v18  ;;  %v328_v36 = vadd.f32 %v312_v24, %v295_v19  ;;  %v315_v37 = vmul.f32 %v380_v27, %v510_v22  ;;  %v316_v38 = vmul.f32 %v381_v28, %v510_v22 }
  0x34   :  { %341 = vst [vmem:[#allocation7] sm:$0xff] %v325_v29  ;;  %342 = vst [vmem:[#allocation7 + $0x8] sm:$0xff] %v326_v30  ;;  %v329_v39 = vadd.f32 %v313_v31, %v296_v25  ;;  %v330_v40 = vadd.f32 %v314_v32, %v297_v26  ;;  %v36_v41 = vadd.s32 8, %v468_v1 }
  0x35   :  { %343 = vst [vmem:[#allocation7 + $0x10] sm:$0xff] %v327_v35  ;;  %344 = vst [vmem:[#allocation7 + $0x18] sm:$0xff] %v328_v36  ;;  %v331_v42 = vadd.f32 %v315_v37, %v298_v33  ;;  %v332_v43 = vadd.f32 %v316_v38, %v299_v34 }
  0x36   :  { %345 = vst [vmem:[#allocation7 + $0x20] sm:$0xff] %v329_v39  ;;  %346 = vst [vmem:[#allocation7 + $0x28] sm:$0xff] %v330_v40  ;;  %v50_v44 = vmul.u32 1024, %v36_v41 }
  0x37   :  { %347 = vst [vmem:[#allocation7 + $0x30] sm:$0xff] %v331_v42  ;;  %348 = vst [vmem:[#allocation7 + $0x38] sm:$0xff] %v332_v43 }
  0x38   :  { %v59_v45 = vadd.s32 %v50_v44, %v470_v2  ;;  %v60_v46 = vadd.s32 %v50_v44, %v479_v5  ;;  %v61_v47 = vadd.s32 %v50_v44, %v482_v6  ;;  %v62_v48 = vadd.s32 %v50_v44, %v485_v7 }
  0x39   :  { %v63_v49 = vadd.s32 %v50_v44, %v488_v8  ;;  %v64_v1 = vadd.s32 %v50_v44, %v491_v9  ;;  %v65_v50 = vadd.s32 %v50_v44, %v494_v10  ;;  %v66_v51 = vadd.s32 %v50_v44, %v497_v11 }
  0x3a   :  { %v75_v52 = vmul.u32 2654435769, %v59_v45  ;;  %v76_v53 = vmul.u32 2654435769, %v60_v46 }
  0x3b   :  { %v77_v54 = vmul.u32 2654435769, %v61_v47  ;;  %v78_v55 = vmul.u32 2654435769, %v62_v48 }
  0x3c   :  { %v92_v2 = vadd.s32 %v475_v3, %v75_v52  ;;  %v93_v5 = vadd.s32 %v475_v3, %v76_v53  ;;  %v79_v56 = vmul.u32 2654435769, %v63_v49  ;;  %v80_v6 = vmul.u32 2654435769, %v64_v1 }
  0x3d   :  { %v94_v7 = vadd.s32 %v475_v3, %v77_v54  ;;  %v95_v8 = vadd.s32 %v475_v3, %v78_v55  ;;  %v81_v57 = vmul.u32 2654435769, %v65_v50  ;;  %v82_v9 = vmul.u32 2654435769, %v66_v51 }
  0x3e   :  { %v108_v58 = vshrl.u32 %v92_v2, 16  ;;  %v109_v10 = vshrl.u32 %v93_v5, 16  ;;  %v96_v11 = vadd.s32 %v475_v3, %v79_v56  ;;  %v97_v59 = vadd.s32 %v475_v3, %v80_v6 }
  0x3f   :  { %v110_v60 = vshrl.u32 %v94_v7, 16  ;;  %v111_v61 = vshrl.u32 %v95_v8, 16  ;;  %v98_v62 = vadd.s32 %v475_v3, %v81_v57  ;;  %v99_v63 = vadd.s32 %v475_v3, %v82_v9 }
  0x40   :  { %v124_v0 = vxor.u32 %v108_v58, %v92_v2  ;;  %v125_v4 = vxor.u32 %v109_v10, %v93_v5  ;;  %v112_v12 = vshrl.u32 %v96_v11, 16  ;;  %v113_v13 = vshrl.u32 %v97_v59, 16 }
  0x41   :  { %v126_v14 = vxor.u32 %v110_v60, %v94_v7  ;;  %v127_v15 = vxor.u32 %v111_v61, %v95_v8  ;;  %v114_v16 = vshrl.u32 %v98_v62, 16  ;;  %v115_v17 = vshrl.u32 %v99_v63, 16 }
  0x42   :  { %v140_v18 = vmul.u32 2246822507, %v124_v0  ;;  %v141_v19 = vmul.u32 2246822507, %v125_v4  ;;  %v128_v20 = vxor.u32 %v112_v12, %v96_v11  ;;  %v129_v21 = vxor.u32 %v113_v13, %v97_v59 }
  0x43   :  { %v142_v23 = vmul.u32 2246822507, %v126_v14  ;;  %v143_v24 = vmul.u32 2246822507, %v127_v15  ;;  %v130_v25 = vxor.u32 %v114_v16, %v98_v62  ;;  %v131_v26 = vxor.u32 %v115_v17, %v99_v63 }
  0x44   :  { %v156_v27 = vshrl.u32 %v140_v18, 13  ;;  %v157_v28 = vshrl.u32 %v141_v19, 13  ;;  %v144_v29 = vmul.u32 2246822507, %v128_v20  ;;  %v145_v3 = vmul.u32 2246822507, %v129_v21 }
  0x45   :  { %v158_v30 = vshrl.u32 %v142_v23, 13  ;;  %v159_v31 = vshrl.u32 %v143_v24, 13  ;;  %v146_v32 = vmul.u32 2246822507, %v130_v25  ;;  %v147_v33 = vmul.u32 2246822507, %v131_v26 }
  0x46   :  { %v172_v34 = vxor.u32 %v156_v27, %v140_v18  ;;  %v173_v35 = vxor.u32 %v157_v28, %v141_v19  ;;  %v160_v36 = vshrl.u32 %v144_v29, 13  ;;  %v161_v37 = vshrl.u32 %v145_v3, 13  ;;  %v301_v25 = vld [vmem:[#allocation4 + $0x48] sm:$0xff] }
  0x47   :  { %v174_v38 = vxor.u32 %v158_v30, %v142_v23  ;;  %v175_v39 = vxor.u32 %v159_v31, %v143_v24  ;;  %v162_v40 = vshrl.u32 %v146_v32, 13  ;;  %v163_v41 = vshrl.u32 %v147_v33, 13  ;;  %v300_v24 = vld [vmem:[#allocation4 + $0x40] sm:$0xff]  ;;  %v302_v31 = vld [vmem:[#allocation4 + $0x50] sm:$0xff] }
  0x48   :  { %v188_v42 = vmul.u32 3266489909, %v172_v34  ;;  %v189_v43 = vmul.u32 3266489909, %v173_v35  ;;  %v176_v44 = vxor.u32 %v160_v36, %v144_v29  ;;  %v177_v45 = vxor.u32 %v161_v37, %v145_v3  ;;  %v304_v37 = vld [vmem:[#allocation4 + $0x60] sm:$0xff] }
  0x49   :  { %v190_v46 = vmul.u32 3266489909, %v174_v38  ;;  %v191_v47 = vmul.u32 3266489909, %v175_v39  ;;  %v178_v48 = vxor.u32 %v162_v40, %v146_v32  ;;  %v179_v49 = vxor.u32 %v163_v41, %v147_v33  ;;  %v303_v32 = vld [vmem:[#allocation4 + $0x58] sm:$0xff]  ;;  %v305_v38 = vld [vmem:[#allocation4 + $0x68] sm:$0xff] }
  0x4a   :  { %v204_v1 = vshrl.u32 %v188_v42, 16  ;;  %v205_v50 = vshrl.u32 %v189_v43, 16  ;;  %v192_v51 = vmul.u32 3266489909, %v176_v44  ;;  %v193_v52 = vmul.u32 3266489909, %v177_v45 }
  0x4b   :  { %v206_v53 = vshrl.u32 %v190_v46, 16  ;;  %v207_v54 = vshrl.u32 %v191_v47, 16  ;;  %v194_v55 = vmul.u32 3266489909, %v178_v48  ;;  %v195_v2 = vmul.u32 3266489909, %v179_v49 }
  0x4c   :  { %v220_v5 = vxor.u32 %v204_v1, %v188_v42  ;;  %v221_v56 = vxor.u32 %v205_v50, %v189_v43  ;;  %v208_v6 = vshrl.u32 %v192_v51, 16  ;;  %v209_v7 = vshrl.u32 %v193_v52, 16  ;;  %v306_v45 = vld [vmem:[#allocation4 + $0x70] sm:$0xff] }
  0x4d   :  { %v222_v8 = vxor.u32 %v206_v53, %v190_v46  ;;  %v223_v57 = vxor.u32 %v207_v54, %v191_v47  ;;  %v210_v9 = vshrl.u32 %v194_v55, 16  ;;  %v211_v58 = vshrl.u32 %v195_v2, 16  ;;  %v307_v46 = vld [vmem:[#allocation4 + $0x78] sm:$0xff] }
  0x4e   :  { %v236_v10 = vshrl.u32 %v220_v5, 9  ;;  %v237_v11 = vshrl.u32 %v221_v56, 9  ;;  %v224_v59 = vxor.u32 %v208_v6, %v192_v51  ;;  %v225_v60 = vxor.u32 %v209_v7, %v193_v52 }
  0x4f   :  { %v238_v61 = vshrl.u32 %v222_v8, 9  ;;  %v239_v62 = vshrl.u32 %v223_v57, 9  ;;  %v226_v63 = vxor.u32 %v210_v9, %v194_v55  ;;  %v227_v0 = vxor.u32 %v211_v58, %v195_v2 }
  0x50   :  { %v252_v4 = vor.u32 1065353216, %v236_v10  ;;  %v253_v12 = vor.u32 1065353216, %v237_v11  ;;  %v240_v13 = vshrl.u32 %v224_v59, 9  ;;  %v241_v14 = vshrl.u32 %v225_v60, 9 }
  0x51   :  { %v254_v15 = vor.u32 1065353216, %v238_v61  ;;  %v255_v16 = vor.u32 1065353216, %v239_v62  ;;  %v242_v17 = vshrl.u32 %v226_v63, 9  ;;  %v243_v18 = vshrl.u32 %v227_v0, 9 }
  0x52   :  { %v382_v19 = vadd.f32 -1.0, %v252_v4  ;;  %v383_v20 = vadd.f32 -1.0, %v253_v12  ;;  %v256_v21 = vor.u32 1065353216, %v240_v13  ;;  %v257_v23 = vor.u32 1065353216, %v241_v14 }
  0x53   :  { %v384_v26 = vadd.f32 -1.0, %v254_v15  ;;  %v385_v27 = vadd.f32 -1.0, %v255_v16  ;;  %v258_v28 = vor.u32 1065353216, %v242_v17  ;;  %v259_v29 = vor.u32 1065353216, %v243_v18 }
  0x54   :  { %v317_v3 = vmul.f32 %v382_v19, %v510_v22  ;;  %v318_v30 = vmul.f32 %v383_v20, %v510_v22  ;;  %v386_v33 = vadd.f32 -1.0, %v256_v21  ;;  %v387_v34 = vadd.f32 -1.0, %v257_v23 }
  0x55   :  { %v319_v35 = vmul.f32 %v384_v26, %v510_v22  ;;  %v320_v36 = vmul.f32 %v385_v27, %v510_v22  ;;  %v388_v39 = vadd.f32 -1.0, %v258_v28  ;;  %v389_v40 = vadd.f32 -1.0, %v259_v29 }
  0x56   :  { %v333_v41 = vadd.f32 %v317_v3, %v300_v24  ;;  %v334_v42 = vadd.f32 %v318_v30, %v301_v25  ;;  %v321_v43 = vmul.f32 %v386_v33, %v510_v22  ;;  %v322_v44 = vmul.f32 %v387_v34, %v510_v22 }
  0x57   :  { %v335_v47 = vadd.f32 %v319_v35, %v302_v31  ;;  %v336_v48 = vadd.f32 %v320_v36, %v303_v32  ;;  %v323_v49 = vmul.f32 %v388_v39, %v510_v22  ;;  %v324_v1 = vmul.f32 %v389_v40, %v510_v22 }
  0x58   :  { %349 = vst [vmem:[#allocation7 + $0x40] sm:$0xff] %v333_v41  ;;  %350 = vst [vmem:[#allocation7 + $0x48] sm:$0xff] %v334_v42  ;;  %v337_v50 = vadd.f32 %v321_v43, %v304_v37  ;;  %v338_v51 = vadd.f32 %v322_v44, %v305_v38 }
  0x59   :  { %351 = vst [vmem:[#allocation7 + $0x50] sm:$0xff] %v335_v47  ;;  %352 = vst [vmem:[#allocation7 + $0x58] sm:$0xff] %v336_v48  ;;  %v339_v52 = vadd.f32 %v323_v49, %v306_v45  ;;  %v340_v53 = vadd.f32 %v324_v1, %v307_v46 }
  0x5a   :  { %353 = vst [vmem:[#allocation7 + $0x60] sm:$0xff] %v337_v50  ;;  %354 = vst [vmem:[#allocation7 + $0x68] sm:$0xff] %v338_v51 }
  0x5b   :  { %355 = vst [vmem:[#allocation7 + $0x70] sm:$0xff] %v339_v52  ;;  %356 = vst [vmem:[#allocation7 + $0x78] sm:$0xff] %v340_v53 }
  0x5c   :  { %425 = shalt.err (!%p422_p9)
}
  0x5d   :  { %368 = dma.vmem_to_hbm [thread:$0]  %s363_s21, 2048, %s562_s3, [#allocation6], %s439_s15, %s439_s15, %s440_s16  }
  0x5e   :  { %436 = dma.done.wait [#allocation6], 2048  }
  0x5f   :  { %437 = vsyncadd [#allocation6], 4294965248 }
  0x60   :  { %372 = vsyncpa [#allocation5], 1 }
  0x61   :  { %373 = vsyncpa [#allocation6], 1 }

</bundles_post_ra>
